<compile_context>
chip_gen: v7x
topology: tpu7x:2x2x1
jax: 0.10.0
libtpu: 0.0.40
codegen_flags: <defaults>
</compile_context>

<pallas_src>
import functools

import jax
import jax.numpy as jnp
from jax import lax
from jax.experimental import pallas as pl
from jax.experimental.pallas import tpu as pltpu

_EPS = 1e-5


def _ln_withbias_kernel(x_ref, w_ref, b_ref, o_ref):
    # x_ref: (C, T) -- channels on sublanes, pixels on lanes.  w/b: (C, 1) f32.
    x = x_ref[...].astype(jnp.float32)
    mu = jnp.mean(x, axis=0, keepdims=True)           # (1, T)  XLU reduce
    d = x - mu                                        # reused below
    var = jnp.mean(d * d, axis=0, keepdims=True)      # population variance
    inv = lax.rsqrt(var + _EPS)                       # EUP rsqrt
    o_ref[...] = (d * inv * w_ref[...] + b_ref[...]).astype(o_ref.dtype)


def _ln_biasfree_kernel(x_ref, w_ref, o_ref):
    x = x_ref[...].astype(jnp.float32)
    mu = jnp.mean(x, axis=0, keepdims=True)
    d = x - mu
    var = jnp.mean(d * d, axis=0, keepdims=True)
    inv = lax.rsqrt(var + _EPS)
    # BiasFree_LayerNorm scales x itself (mean only enters the variance).
    o_ref[...] = (x * inv * w_ref[...]).astype(o_ref.dtype)


def _vmem_capacity_bytes():
    try:
        return int(pltpu.get_tpu_info().vmem_capacity_bytes)
    except Exception:
        return 64 * 1024 * 1024  # conservative (v7x-sized) fallback


@functools.partial(jax.jit, static_argnames=("ln_type",))
def layernorm(x, weight, bias=None, *, ln_type="WithBias"):
    """LayerNorm over the channel axis of x (B, C, H, W), matching
    LayerNorm(dim, LayerNorm_type).forward: to_3d -> norm over C -> to_4d.
    Returns the same shape/dtype as x."""
    if ln_type != "BiasFree" and bias is None:
        raise ValueError("ln_type='WithBias' requires a bias parameter")

    B, C, H, W = x.shape
    HW = H * W
    itemsize = jnp.dtype(x.dtype).itemsize

    # --- lane-axis tiling sized against the per-generation VMEM budget ---
    vmem_cap = _vmem_capacity_bytes()
    # ~vmem_cap/16 per block, capped at 8 MiB: 8 MiB on 128 MiB parts (v5e/v6e),
    # 4 MiB on 64 MiB parts (v7x).
    target_block_bytes = min(max(vmem_cap // 16, 1 << 20), 8 << 20)
    lanes_budget = (target_block_bytes // max(C * itemsize, 1)) // 128 * 128
    max_tile = max(lanes_budget, 128)
    # >=512-lane floor whenever the double-buffered f32 working set still fits
    # comfortably (measured: 128-lane tiles reach ~29% of HBM roofline, >=512 ~85%).
    if max_tile < 512 and 6 * C * 512 * 4 <= vmem_cap // 2:
        max_tile = 512

    if HW <= max_tile:
        tile_hw = HW              # full-extent lane block (no 128-divisibility needed)
        grid_hw = 1
    else:
        tile_hw = max_tile        # multiple of 128; last block overhangs, Pallas masks it
        grid_hw = pl.cdiv(HW, tile_hw)

    # v7x has 2 TensorCores: make sure the "parallel" grid has >=2 steps so the
    # kernel is not pinned to one TC.  Harmless single extra step on v5e/v6e.
    if B == 1 and grid_hw == 1 and HW >= 256:
        tile_hw = ((HW + 255) // 256) * 128   # ~HW/2, multiple of 128
        grid_hw = pl.cdiv(HW, tile_hw)

    x3 = x.reshape(B, C, HW)

    # Hoist the f32 cast of the resident (constant-index) weight/bias blocks.
    w2 = weight.astype(jnp.float32).reshape(C, 1)

    # Scoped-VMEM sizing: double-buffered in/out blocks + in-kernel f32 temporaries
    # (x, d, products) + tiny weight/bias blocks.  Leave headroom under physical VMEM.
    block_bytes = C * tile_hw * itemsize
    f32_block = C * tile_hw * 4
    est_vmem = 2 * block_bytes + 2 * block_bytes + 3 * f32_block + 4 * C * 4
    vmem_cap_margin = max(vmem_cap - (16 << 20), 32 << 20)
    vmem_limit = int(min(max(2 * est_vmem, 16 << 20), vmem_cap_margin))

    x_spec = pl.BlockSpec((pl.Squeezed(), C, tile_hw), lambda b, j: (b, 0, j))
    out_spec = pl.BlockSpec((pl.Squeezed(), C, tile_hw), lambda b, j: (b, 0, j))
    wb_spec = pl.BlockSpec((C, 1), lambda b, j: (0, 0))

    cparams = pltpu.CompilerParams(
        dimension_semantics=("parallel", "parallel"),
        vmem_limit_bytes=vmem_limit,
    )

    if ln_type == "BiasFree":
        out3 = pl.pallas_call(
            _ln_biasfree_kernel,
            out_shape=jax.ShapeDtypeStruct((B, C, HW), x.dtype),
            grid_spec=pltpu.PrefetchScalarGridSpec(
                num_scalar_prefetch=0,
                grid=(B, grid_hw),
                in_specs=[x_spec, wb_spec],
                out_specs=out_spec,
            ),
            compiler_params=cparams,
        )(x3, w2)
    else:
        b2 = bias.astype(jnp.float32).reshape(C, 1)
        out3 = pl.pallas_call(
            _ln_withbias_kernel,
            out_shape=jax.ShapeDtypeStruct((B, C, HW), x.dtype),
            grid_spec=pltpu.PrefetchScalarGridSpec(
                num_scalar_prefetch=0,
                grid=(B, grid_hw),
                in_specs=[x_spec, wb_spec, wb_spec],
                out_specs=out_spec,
            ),
            compiler_params=cparams,
        )(x3, w2, b2)

    return out3.reshape(B, C, H, W)


def reference_layernorm(x, weight, bias=None, ln_type="WithBias"):
    x32 = x.astype(jnp.float32)
    mu = jnp.mean(x32, axis=1, keepdims=True)
    var = jnp.mean((x32 - mu) ** 2, axis=1, keepdims=True)
    w = weight.astype(jnp.float32)[None, :, None, None]
    if ln_type == "BiasFree":
        y = x32 / jnp.sqrt(var + _EPS) * w
    else:
        b = bias.astype(jnp.float32)[None, :, None, None]
        y = (x32 - mu) / jnp.sqrt(var + _EPS) * w + b
    return y.astype(x.dtype)


if __name__ == "__main__":
    key = jax.random.PRNGKey(0)
    k_x, k_w, k_b = jax.random.split(key, 3)

    # LayerNorm(dim=32) applied to a (B, C, H, W) feature map, as in SMAE-Fusion.
    B, C, H, W = 2, 32, 16, 16
    x = jax.random.normal(k_x, (B, C, H, W), dtype=jnp.float32)
    weight = jnp.ones((C,), jnp.float32) + 0.1 * jax.random.normal(k_w, (C,), jnp.float32)
    bias = jnp.zeros((C,), jnp.float32) + 0.1 * jax.random.normal(k_b, (C,), jnp.float32)

    out_wb = jax.block_until_ready(layernorm(x, weight, bias, ln_type="WithBias"))
    ref_wb = reference_layernorm(x, weight, bias, ln_type="WithBias")
    assert out_wb.shape == x.shape and out_wb.dtype == x.dtype
    assert jnp.max(jnp.abs(out_wb - ref_wb)) < 1e-4, "WithBias mismatch vs reference"

    out_bf = jax.block_until_ready(layernorm(x, weight, None, ln_type="BiasFree"))
    ref_bf = reference_layernorm(x, weight, None, ln_type="BiasFree")
    assert jnp.max(jnp.abs(out_bf - ref_bf)) < 1e-4, "BiasFree mismatch vs reference"

    # Odd spatial extent (HW=189): exercises the full-extent (non-128) lane block.
    x_odd = jax.random.normal(k_x, (B, C, 9, 21), dtype=jnp.float32)
    out_odd = jax.block_until_ready(layernorm(x_odd, weight, bias, ln_type="WithBias"))
    ref_odd = reference_layernorm(x_odd, weight, bias, ln_type="WithBias")
    assert jnp.max(jnp.abs(out_odd - ref_odd)) < 1e-4, "odd-extent mismatch vs reference"

    # B=1, HW=400: triggers the two-TC lane split (tile 256, grid 2) with an
    # overhanging last block -> exercises the unpadded OOB-masked-write path.
    x_one = jax.random.normal(k_x, (1, C, 20, 20), dtype=jnp.float32)
    out_one = jax.block_until_ready(layernorm(x_one, weight, bias, ln_type="WithBias"))
    ref_one = reference_layernorm(x_one, weight, bias, ln_type="WithBias")
    assert jnp.max(jnp.abs(out_one - ref_one)) < 1e-4, "partial-block mismatch vs reference"

    print("KERNEL_OK")
</pallas_src>

<mosaic_0001>
module attributes {stable_mosaic.version = 11 : i64} {
  func.func @_ln_withbias_kernel(%arg0: i32, %arg1: i32, %arg2: memref<1x32x256xf32, #tpu.memory_space<vmem>>, %arg3: memref<32x1xf32, #tpu.memory_space<vmem>>, %arg4: memref<32x1xf32, #tpu.memory_space<vmem>>, %arg5: memref<1x32x256xf32, #tpu.memory_space<vmem>>) attributes {dimension_semantics = [#tpu.dimension_semantics<parallel>, #tpu.dimension_semantics<parallel>], iteration_bounds = array<i64: 2, 1>, scalar_prefetch = 0 : i64, scratch_operands = 0 : i64, tpu.core_type = #tpu.core_type<tc>, window_params = [{transform_indices = @transform_0, window_bounds = array<i64: 1, 32, 256>}, {pipeline_mode = #tpu.pipeline_mode<synchronous>, transform_indices = @transform_1, window_bounds = array<i64: 32, 1>}, {pipeline_mode = #tpu.pipeline_mode<synchronous>, transform_indices = @transform_2, window_bounds = array<i64: 32, 1>}, {transform_indices = @transform_3, window_bounds = array<i64: 1, 32, 256>}]} {
    %c0 = arith.constant 0 : index
    %c0_0 = arith.constant 0 : index
    %c0_1 = arith.constant 0 : index
    %0 = vector.load %arg2[%c0, %c0_0, %c0_1] : memref<1x32x256xf32, #tpu.memory_space<vmem>>, vector<1x32x256xf32>
    %1 = vector.shape_cast %0 : vector<1x32x256xf32> to vector<32x256xf32>
    %cst = arith.constant dense<0.000000e+00> : vector<256xf32>
    %2 = vector.multi_reduction <add>, %1, %cst [0] : vector<32x256xf32> to vector<256xf32>
    %3 = vector.shape_cast %2 : vector<256xf32> to vector<1x256xf32>
    %cst_2 = arith.constant 3.200000e+01 : f32
    %4 = vector.broadcast %cst_2 : f32 to vector<1x256xf32>
    %5 = arith.divf %3, %4 : vector<1x256xf32>
    %6 = vector.broadcast %5 : vector<1x256xf32> to vector<32x256xf32>
    %7 = arith.subf %1, %6 : vector<32x256xf32>
    %8 = arith.mulf %7, %7 : vector<32x256xf32>
    %cst_3 = arith.constant dense<0.000000e+00> : vector<256xf32>
    %9 = vector.multi_reduction <add>, %8, %cst_3 [0] : vector<32x256xf32> to vector<256xf32>
    %10 = vector.shape_cast %9 : vector<256xf32> to vector<1x256xf32>
    %cst_4 = arith.constant 3.200000e+01 : f32
    %11 = vector.broadcast %cst_4 : f32 to vector<1x256xf32>
    %12 = arith.divf %10, %11 : vector<1x256xf32>
    %cst_5 = arith.constant 9.99999974E-6 : f32
    %13 = vector.broadcast %cst_5 : f32 to vector<1x256xf32>
    %14 = arith.addf %12, %13 : vector<1x256xf32>
    %15 = math.rsqrt %14 : vector<1x256xf32>
    %16 = vector.broadcast %15 : vector<1x256xf32> to vector<32x256xf32>
    %17 = arith.mulf %7, %16 : vector<32x256xf32>
    %c0_6 = arith.constant 0 : index
    %c0_7 = arith.constant 0 : index
    %18 = vector.load %arg3[%c0_6, %c0_7] : memref<32x1xf32, #tpu.memory_space<vmem>>, vector<32x1xf32>
    %19 = vector.broadcast %18 : vector<32x1xf32> to vector<32x256xf32>
    %20 = arith.mulf %17, %19 : vector<32x256xf32>
    %c0_8 = arith.constant 0 : index
    %c0_9 = arith.constant 0 : index
    %21 = vector.load %arg4[%c0_8, %c0_9] : memref<32x1xf32, #tpu.memory_space<vmem>>, vector<32x1xf32>
    %22 = vector.broadcast %21 : vector<32x1xf32> to vector<32x256xf32>
    %23 = arith.addf %20, %22 : vector<32x256xf32>
    %c0_10 = arith.constant 0 : index
    %c0_11 = arith.constant 0 : index
    %c0_12 = arith.constant 0 : index
    %24 = vector.load %arg5[%c0_10, %c0_11, %c0_12] : memref<1x32x256xf32, #tpu.memory_space<vmem>>, vector<1x32x256xf32>
    %25 = vector.shape_cast %24 : vector<1x32x256xf32> to vector<32x256xf32>
    %26 = vector.shape_cast %23 : vector<32x256xf32> to vector<1x32x256xf32>
    tpu.vector_store %arg5[%c0_10, %c0_11, %c0_12], %26 {strides = array<i32>} : memref<1x32x256xf32, #tpu.memory_space<vmem>>, vector<1x32x256xf32>,
    return
  }
  func.func @transform_0(%arg0: i32, %arg1: i32) -> (i32, i32, i32) {
    %c0_i32 = arith.constant 0 : i32
    %c0_i32_0 = arith.constant 0 : i32
    return %arg0, %c0_i32, %arg1 : i32, i32, i32
  }
  func.func @transform_1(%arg0: i32, %arg1: i32) -> (i32, i32) {
    %c0_i32 = arith.constant 0 : i32
    %c0_i32_0 = arith.constant 0 : i32
    %c0_i32_1 = arith.constant 0 : i32
    return %c0_i32, %c0_i32_0 : i32, i32
  }
  func.func @transform_2(%arg0: i32, %arg1: i32) -> (i32, i32) {
    %c0_i32 = arith.constant 0 : i32
    %c0_i32_0 = arith.constant 0 : i32
    %c0_i32_1 = arith.constant 0 : i32
    return %c0_i32, %c0_i32_0 : i32, i32
  }
  func.func @transform_3(%arg0: i32, %arg1: i32) -> (i32, i32, i32) {
    %c0_i32 = arith.constant 0 : i32
    %c0_i32_0 = arith.constant 0 : i32
    return %arg0, %c0_i32, %arg1 : i32, i32, i32
  }
}

</mosaic_0001>

<bundles_post_ra>
// kernel: layernorm.1
= control target key start
LH: loop header
LB: loop body
LE: loop exit
PB: predicated region body
PF: predicated region fallthrough
CT: control target
= control target key end

     0   :  { %s535_s12 = smov 0   ;;  %s537_s13 = smov 0   ;;  %s599_s0 = inlined_call_operand.vmem [shape: f32[2,32,256], index: 0, kind: input, shape index: {}]   ;;  %s600_s1 = inlined_call_operand.vmem [shape: f32[32,1], index: 1, kind: input, shape index: {}]   ;;  %s601_s2 = inlined_call_operand.vmem [shape: f32[32,1], index: 2, kind: input, shape index: {}]   ;;  %s602_s3 = inlined_call_operand.vmem [shape: f32[2,32,256], index: 3, kind: output, shape index: {}]  }
   0x1   :  { %s539_s14 = smov 0  }
   0x2 LB: > { %s25_s15 = sadd.s32 1, %s508_s13  ;;  %p450_p0 = scmp.ge.s32.totalorder %s512_s14, 1  ;;  %s512_s14 = sphi %s539_s14, %s13_s14   ;;  %s508_s13 = sphi %s537_s13, %s604_s13   ;;  %s504_s12 = sphi %s535_s12, %s603_s12  }
   0x3   : > { %p27_p1 = scmp.ge.s32.totalorder %s25_s15, 2  ;;  %p158_p2 = scmp.lt.s32.totalorder %s512_s14, 3 }
   0x5   : > { %s606_s15 = smov (%p27_p1, %s25_s15), 0  ;;  %p159_p3 = pnand %p450_p0, %p158_p2 }
   0x6   : > { %v289_v0 = vld [vmem:[%s600_s1 + $0x10] sm:$0xff] (!%p159_p3)  ;;  %v287_v1 = vld [vmem:[%s600_s1] sm:$0xff] (!%p159_p3)  ;;  %v514_v2 = vmov (!%p159_p3), 0   ;;  %v290_v3 = vld [vmem:[%s600_s1 + $0x18] sm:$0xff] (!%p159_p3)  ;;  %p191_p4 = scmp.lt.s32.totalorder (!%p159_p3), %s504_s12, 1 }
   0x7   : > { %162 = sbr.rel (%p159_p3) target bundleno = 152 (0x98), region = 32  ;;  %485 = vset.pattern.permute.xlu1 (!%p159_p3), %v514_v2  ;;  %484 = vset.pattern.permute.xlu0 (!%p159_p3), %v514_v2  ;;  %v288_v4 = vld [vmem:[%s600_s1 + $0x8] sm:$0xff] (!%p159_p3)  ;;  %v319_v6 = vld [vmem:[%s601_s2] sm:$0xff] (!%p159_p3)  ;;  %v322_v7 = vld [vmem:[%s601_s2 + $0x18] sm:$0xff] (!%p159_p3) }
   0x8   : > { %303 = vperm.xlu1 (!%p159_p3), %485, %v289_v0   ;;  %293 = vperm.xlu0 (!%p159_p3), %484, %v287_v1   ;;  %v320_v5 = vld [vmem:[%s601_s2 + $0x8] sm:$0xff] (!%p159_p3)  ;;  %v321_v8 = vld [vmem:[%s601_s2 + $0x10] sm:$0xff] (!%p159_p3) }
   0xc   : > { %308 = vperm.xlu1 (!%p159_p3), %485, %v290_v3   ;;  %298 = vperm.xlu0 (!%p159_p3), %484, %v288_v4  }
   0xe   : > { %s608_s12 = smov (!%p191_p4, %s504_s12), 1 }
   0xf   : > { %s457_s5 = sshll.u32 %s608_s12, 6 }
  0x10   : > { %330 = vperm.xlu1 %485, %v320_v5   ;;  %325 = vperm.xlu0 %484, %v319_v6   ;;  %s198_s8 = scalar_lea.vmem %s599_s0, %s457_s5  ;;  %s208_s11 = scalar_lea.vmem %s602_s3, %s457_s5 }
  0x11   : > { %v210_v9 = vld [vmem:[%s198_s8] sm:$0xff]  ;;  %v212_v10 = vld [vmem:[%s198_s8 + $0x10] sm:$0xff]  ;;  %v211_v11 = vld [vmem:[%s198_s8 + $0x8] sm:$0xff] }
  0x12   : > { %v213_v12 = vld [vmem:[%s198_s8 + $0x18] sm:$0xff]  ;;  %v218_v13 = vadd.f32 %v212_v10, %v210_v9  ;;  %v214_v14 = vld [vmem:[%s198_s8 + $0x20] sm:$0xff]  ;;  %v215_v16 = vld [vmem:[%s198_s8 + $0x28] sm:$0xff] }
  0x13   : > { %v227_v15 = vadd.f32 %v213_v12, %v211_v11  ;;  %v216_v18 = vld [vmem:[%s198_s8 + $0x30] sm:$0xff]  ;;  %v217_v20 = vld [vmem:[%s198_s8 + $0x38] sm:$0xff] }
  0x14   : > { %340 = vperm.xlu1 %485, %v322_v7   ;;  %335 = vperm.xlu0 %484, %v321_v8   ;;  %v219_v17 = vadd.f32 %v218_v13, %v214_v14 }
  0x15   : > { %v228_v19 = vadd.f32 %v227_v15, %v215_v16 }
  0x16   : > { %v220_v21 = vadd.f32 %v219_v17, %v216_v18 }
  0x17   : > { %v229_v22 = vadd.f32 %v228_v19, %v217_v20 }
  0x18   : > { %v221_v23 = vrot.slane %v220_v21, 4 }
  0x19   : > { %v230_v24 = vrot.slane %v229_v22, 4 }
  0x1a   : > { %v222_v25 = vadd.f32 %v221_v23, %v220_v21 }
  0x1b   : > { %v231_v26 = vadd.f32 %v230_v24, %v229_v22 }
  0x1c   : > { %v223_v27 = vrot.slane %v222_v25, 2 }
  0x1d   : > { %v232_v28 = vrot.slane %v231_v26, 2 }
  0x1e   : > { %v224_v29 = vadd.f32 %v223_v27, %v222_v25 }
  0x1f   : > { %v233_v30 = vadd.f32 %v232_v28, %v231_v26 }
  0x20   : > { %v225_v31 = vrot.slane %v224_v29, 1 }
  0x21   : > { %v234_v32 = vrot.slane %v233_v30, 1 }
  0x22   : > { %v226_v33 = vadd.f32 %v225_v31, %v224_v29 }
  0x23   : > { %v235_v34 = vadd.f32 %v234_v32, %v233_v30 }
  0x24   : > { %v237_v35 = vmul.f32 0.03125, %v226_v33 }
  0x25   : > { %v238_v36 = vmul.f32 0.03125, %v235_v34 }
  0x26   : > { %v239_v37 = vsub.f32 %v210_v9, %v237_v35  ;;  %v241_v38 = vsub.f32 %v212_v10, %v237_v35  ;;  %v243_v41 = vsub.f32 %v214_v14, %v237_v35  ;;  %v245_v47 = vsub.f32 %v216_v18, %v237_v35 }
  0x27   : > { %v240_v39 = vsub.f32 %v211_v11, %v238_v36  ;;  %v242_v40 = vsub.f32 %v213_v12, %v238_v36  ;;  %v244_v44 = vsub.f32 %v215_v16, %v238_v36  ;;  %v246_v50 = vsub.f32 %v217_v20, %v238_v36 }
  0x28   : > { %v247_v42 = vmul.f32 %v239_v37, %v239_v37  ;;  %v249_v43 = vmul.f32 %v241_v38, %v241_v38  ;;  %v251_v48 = vmul.f32 %v243_v41, %v243_v41  ;;  %v253_v53 = vmul.f32 %v245_v47, %v245_v47 }
  0x29   : > { %v248_v45 = vmul.f32 %v240_v39, %v240_v39  ;;  %v250_v46 = vmul.f32 %v242_v40, %v242_v40  ;;  %v252_v51 = vmul.f32 %v244_v44, %v244_v44  ;;  %v254_v55 = vmul.f32 %v246_v50, %v246_v50 }
  0x2a   : > { %v255_v49 = vadd.f32 %v249_v43, %v247_v42 }
  0x2b   : > { %v264_v52 = vadd.f32 %v250_v46, %v248_v45 }
  0x2c   : > { %v256_v54 = vadd.f32 %v255_v49, %v251_v48 }
  0x2d   : > { %v265_v56 = vadd.f32 %v264_v52, %v252_v51 }
  0x2e   : > { %v257_v57 = vadd.f32 %v256_v54, %v253_v53 }
  0x2f   : > { %v266_v58 = vadd.f32 %v265_v56, %v254_v55 }
  0x30   : > { %v258_v59 = vrot.slane %v257_v57, 4 }
  0x31   : > { %v267_v60 = vrot.slane %v266_v58, 4 }
  0x32   : > { %v259_v61 = vadd.f32 %v258_v59, %v257_v57 }
  0x33   : > { %v268_v62 = vadd.f32 %v267_v60, %v266_v58 }
  0x34   : > { %v260_v63 = vrot.slane %v259_v61, 2 }
  0x35   : > { %v269_v0 = vrot.slane %v268_v62, 2 }
  0x36   : > { %v261_v1 = vadd.f32 %v260_v63, %v259_v61 }
  0x37   : > { %v270_v2 = vadd.f32 %v269_v0, %v268_v62 }
  0x38   : > { %v262_v3 = vrot.slane %v261_v1, 1 }
  0x39   : > { %v271_v4 = vrot.slane %v270_v2, 1 }
  0x3a   : > { %v263_v5 = vadd.f32 %v262_v3, %v261_v1 }
  0x3b   : > { %v272_v6 = vadd.f32 %v271_v4, %v270_v2 }
  0x3c   : > { %v273_v7 = vmul.f32 0.03125, %v263_v5 }
  0x3d   : > { %v274_v8 = vmul.f32 0.03125, %v272_v6 }
  0x3e   : > { %v275_v9 = vadd.f32 1e-05, %v273_v7 }
  0x3f   : > { %v276_v10 = vadd.f32 1e-05, %v274_v8 }
  0x40   : > { %486 = vrsqrt.f32 %v275_v9 }
  0x41   : > { %488 = vrsqrt.f32 %v276_v10 }
  0x4a   : > { %v487_v11 = vpop.eup %486 }
  0x4b   : > { %v489_v12 = vpop.eup %488  ;;  %v279_v15 = vmul.f32 %v487_v11, %v239_v37  ;;  %v281_v17 = vmul.f32 %v487_v11, %v241_v38  ;;  %v283_v21 = vmul.f32 %v487_v11, %v243_v41  ;;  %v285_v23 = vmul.f32 %v487_v11, %v245_v47 }
  0x4c   : > { %v280_v16 = vmul.f32 %v489_v12, %v240_v39  ;;  %v282_v18 = vmul.f32 %v489_v12, %v242_v40  ;;  %v284_v22 = vmul.f32 %v489_v12, %v244_v44  ;;  %v286_v24 = vmul.f32 %v489_v12, %v246_v50 }
  0x87   : > { %v304_v13 = vpop.permute.xlu1 %303  ;;  %v294_v14 = vpop.permute.xlu0 %293 }
  0x88   : > { %v311_v25 = vmul.f32 %v294_v14, %v279_v15  ;;  %v312_v26 = vmul.f32 %v294_v14, %v280_v16  ;;  %v315_v35 = vmul.f32 %v304_v13, %v283_v21  ;;  %v316_v36 = vmul.f32 %v304_v13, %v284_v22 }
  0x8b   : > { %v309_v19 = vpop.permute.xlu1 %308  ;;  %v299_v20 = vpop.permute.xlu0 %298 }
  0x8c   : > { %v313_v27 = vmul.f32 %v299_v20, %v281_v17  ;;  %v314_v28 = vmul.f32 %v299_v20, %v282_v18  ;;  %v317_v37 = vmul.f32 %v309_v19, %v285_v23  ;;  %v318_v38 = vmul.f32 %v309_v19, %v286_v24 }
  0x8f   : > { %v331_v29 = vpop.permute.xlu1 %330  ;;  %v326_v30 = vpop.permute.xlu0 %325 }
  0x90   : > { %v345_v31 = vadd.f32 %v331_v29, %v313_v27  ;;  %v346_v32 = vadd.f32 %v331_v29, %v314_v28  ;;  %v343_v33 = vadd.f32 %v326_v30, %v311_v25  ;;  %v344_v34 = vadd.f32 %v326_v30, %v312_v26 }
  0x92   : > { %353 = vst [vmem:[%s208_s11 + $0x10] sm:$0xff] %v345_v31  ;;  %354 = vst [vmem:[%s208_s11 + $0x18] sm:$0xff] %v346_v32 }
  0x93   : > { %351 = vst [vmem:[%s208_s11] sm:$0xff] %v343_v33  ;;  %352 = vst [vmem:[%s208_s11 + $0x8] sm:$0xff] %v344_v34  ;;  %v341_v39 = vpop.permute.xlu1 %340  ;;  %v336_v40 = vpop.permute.xlu0 %335 }
  0x94   : > { %v349_v41 = vadd.f32 %v341_v39, %v317_v37  ;;  %v350_v42 = vadd.f32 %v341_v39, %v318_v38  ;;  %v347_v43 = vadd.f32 %v336_v40, %v315_v35  ;;  %v348_v44 = vadd.f32 %v336_v40, %v316_v36 }
  0x96   : > { %357 = vst [vmem:[%s208_s11 + $0x30] sm:$0xff] %v349_v41  ;;  %358 = vst [vmem:[%s208_s11 + $0x38] sm:$0xff] %v350_v42 }
  0x97   : > { %355 = vst [vmem:[%s208_s11 + $0x20] sm:$0xff] %v347_v43  ;;  %356 = vst [vmem:[%s208_s11 + $0x28] sm:$0xff] %v348_v44 }
  0x98 PF: > { %s13_s14 = sadd.s32 1, %s512_s14   ;;  %s603_s12 = smov %s508_s13 }
  0x99   : > { %p10_p5 = scmp.ge.s32.totalorder %s13_s14, 4   ;;  %s604_s13 = smov %s606_s15 }
  0x9b   :  { %12 = sbr.rel (!%p10_p5) target bundleno = 2 (0x2), region = 62 }

</bundles_post_ra>
